<compile_context>
chip_gen: v5e
topology: v5e:2x2
jax: 0.10.0
libtpu: 0.0.40
codegen_flags: <defaults>
</compile_context>

<pallas_src>
import functools

import jax
import jax.numpy as jnp
from jax.experimental import pallas as pl
from jax.experimental.pallas import tpu as pltpu

_LANE = 128
_SUBLANE = 8


def _round_up(x, m):
    return ((x + m - 1) // m) * m


def _layer_dims(feature_size: int, datatype: str):
    """Reproduce the layer-size logic of autoencoder.__init__."""
    f = feature_size
    if datatype == "toy":
        enc = [f, f - 1, f - 2]
        dec = [f - 2, f - 1, f]
    elif datatype == "NADC":
        enc = [f, int(f * 0.75), int(f * 0.5)]
        dec = [int(f * 0.5), int(f * 0.75), int(f)]
    elif datatype in ["IDS2017", "IDS2012"]:
        enc = [f, int(f * 0.75), int(f * 0.5), int(f * 0.25), int(f * 0.1)]
        dec = [int(f * 0.1), int(f * 0.25), int(f * 0.5), int(f * 0.75), int(f)]
    else:
        raise ValueError(datatype)
    return enc, dec


def _init_params(key, enc_dims, dec_dims):
    """Deterministic PyTorch-Linear-style init (U(-1/sqrt(fan_in), 1/sqrt(fan_in)))."""
    params = []
    dims = list(zip(enc_dims[:-1], enc_dims[1:])) + list(zip(dec_dims[:-1], dec_dims[1:]))
    for (fan_in, fan_out) in dims:
        key, kw, kb = jax.random.split(key, 3)
        bound = 1.0 / jnp.sqrt(jnp.float32(fan_in))
        w = jax.random.uniform(kw, (fan_in, fan_out), jnp.float32, -bound, bound)
        b = jax.random.uniform(kb, (1, fan_out), jnp.float32, -bound, bound)
        params.append((w, b))
    return params


def prepare_params(params):
    """One-time host-side parameter prep (done OUTSIDE the forward path).

    * Interior layer widths are zero-padded up to a multiple of 128 lanes so
      every intermediate activation / matmul is lane-dense.
    * The first layer keeps its raw input width F (so raw x feeds it directly)
      and the last layer keeps its raw output width F (so the kernel writes the
      un-padded output directly) — both are legal BlockSpec dims because they
      equal the full array dims.
    * Weights are cast to bfloat16 (MXU-native); biases stay f32.
    Zero padding is numerically exact: padded weight rows/cols and bias entries
    are 0, so padded lanes are exactly 0.0 and stay 0.0 through ReLU and all
    subsequent layers.
    """
    n = len(params)
    prepped = []
    for li, (w, b) in enumerate(params):
        fi, fo = w.shape
        fi_p = fi if li == 0 else _round_up(fi, _LANE)
        fo_p = fo if li == n - 1 else _round_up(fo, _LANE)
        w_p = jnp.zeros((fi_p, fo_p), jnp.bfloat16).at[:fi, :fo].set(w.astype(jnp.bfloat16))
        b_p = jnp.zeros((1, fo_p), jnp.float32).at[:, :fo].set(b)
        prepped.append((w_p, b_p))
    return prepped


def _ae_kernel(n_enc_layers, n_total_layers, *refs):
    """Fused autoencoder forward on one batch tile.

    refs = (x_ref, w0, b0, w1, b1, ..., wN-1, bN-1, out_ref)
    ReLU after every layer except the last encoder layer and the last decoder
    layer (matches nn.Sequential(..., Linear) with no trailing ReLU).
    """
    x_ref = refs[0]
    out_ref = refs[-1]
    wb_refs = refs[1:-1]

    h = x_ref[...]  # (bt, F) f32
    for li in range(n_total_layers):
        w = wb_refs[2 * li][...]        # bf16 (Ki, Ni)
        b = wb_refs[2 * li + 1][...]    # f32  (1, Ni)
        h = jnp.dot(h.astype(jnp.bfloat16), w,
                    preferred_element_type=jnp.float32) + b
        is_last_enc = li == n_enc_layers - 1
        is_last_dec = li == n_total_layers - 1
        if not (is_last_enc or is_last_dec):
            h = jnp.maximum(h, 0.0)
    out_ref[...] = h.astype(out_ref.dtype)


def autoencoder_forward(x, prepped_params, n_enc_layers, *, batch_tile=2048):
    """Fused forward pass. `prepped_params` must come from prepare_params()."""
    B, F = x.shape
    n_total = len(prepped_params)
    f_out = prepped_params[-1][0].shape[1]  # == F (last layer kept un-padded)

    # Single fat step for small/medium batches; tile only when B exceeds
    # batch_tile (VMEM footprint is tiny: ~0.3 MiB weights + ~2*bt*KB acts).
    bt = max(_SUBLANE, min(_round_up(batch_tile, _SUBLANE), _round_up(B, _SUBLANE)))
    grid = (pl.cdiv(B, bt),)

    in_specs = [pl.BlockSpec((bt, F), lambda i: (i, 0))]
    flat_wb = []
    for (w, b) in prepped_params:
        in_specs.append(pl.BlockSpec(w.shape, lambda i: (0, 0)))   # grid-invariant
        in_specs.append(pl.BlockSpec(b.shape, lambda i: (0, 0)))
        flat_wb.extend([w, b])
    out_spec = pl.BlockSpec((bt, f_out), lambda i: (i, 0))

    flops = 2 * B * sum(int(w.shape[0]) * int(w.shape[1]) for (w, _) in prepped_params)
    bytes_accessed = (x.size * x.dtype.itemsize
                      + B * f_out * 4
                      + sum(int(w.size) * 2 + int(b.size) * 4 for (w, b) in prepped_params))

    kernel = functools.partial(_ae_kernel, n_enc_layers, n_total)

    return pl.pallas_call(
        kernel,
        out_shape=jax.ShapeDtypeStruct((B, f_out), jnp.float32),
        grid_spec=pltpu.PrefetchScalarGridSpec(
            num_scalar_prefetch=0,
            grid=grid,
            in_specs=in_specs,
            out_specs=out_spec,
        ),
        compiler_params=pltpu.CompilerParams(
            dimension_semantics=("parallel",),   # batch tiles are independent
        ),
        cost_estimate=pl.CostEstimate(flops=flops, transcendentals=0,
                                      bytes_accessed=bytes_accessed),
    )(x, *flat_wb)


def autoencoder_reference(x, params, n_enc_layers, *, bf16_matmul=True):
    """Plain-JAX reference mirroring the PyTorch forward on un-padded params.

    With bf16_matmul=True it mirrors the kernel's bf16-operand / f32-accumulate
    matmuls so the comparison tolerance can stay tight.
    """
    h = x
    n_total = len(params)
    for li, (w, b) in enumerate(params):
        if bf16_matmul:
            h = jnp.dot(h.astype(jnp.bfloat16), w.astype(jnp.bfloat16),
                        preferred_element_type=jnp.float32) + b
        else:
            h = h @ w + b
        if li != n_enc_layers - 1 and li != n_total - 1:
            h = jnp.maximum(h, 0.0)
    return h


if __name__ == "__main__":
    FEATURE_SIZE = 40          # IDS2017-style: 40->30->20->10->4->10->20->30->40
    DATATYPE = "IDS2017"
    BATCH = 64                 # small demo batch; single grid step

    enc_dims, dec_dims = _layer_dims(FEATURE_SIZE, DATATYPE)
    n_enc_layers = len(enc_dims) - 1

    key = jax.random.PRNGKey(0)
    key, kx = jax.random.split(key)
    params = _init_params(key, enc_dims, dec_dims)
    x = jax.random.normal(kx, (BATCH, FEATURE_SIZE), jnp.float32)

    prepped = prepare_params(params)           # one-time, outside forward path

    out = autoencoder_forward(x, prepped, n_enc_layers)
    out = jax.block_until_ready(out)

    ref = autoencoder_reference(x, params, n_enc_layers, bf16_matmul=True)
    assert out.shape == (BATCH, FEATURE_SIZE)
    assert jnp.allclose(out, ref, atol=2e-3, rtol=2e-3), "mismatch vs reference"

    print("KERNEL_OK")
</pallas_src>

<mosaic_0001>
module attributes {stable_mosaic.version = 11 : i64} {
  func.func @_ae_kernel(%arg0: i32, %arg1: memref<64x40xf32, #tpu.memory_space<vmem>>, %arg2: memref<40x128xbf16, #tpu.memory_space<vmem>>, %arg3: memref<1x128xf32, #tpu.memory_space<vmem>>, %arg4: memref<128x128xbf16, #tpu.memory_space<vmem>>, %arg5: memref<1x128xf32, #tpu.memory_space<vmem>>, %arg6: memref<128x128xbf16, #tpu.memory_space<vmem>>, %arg7: memref<1x128xf32, #tpu.memory_space<vmem>>, %arg8: memref<128x128xbf16, #tpu.memory_space<vmem>>, %arg9: memref<1x128xf32, #tpu.memory_space<vmem>>, %arg10: memref<128x128xbf16, #tpu.memory_space<vmem>>, %arg11: memref<1x128xf32, #tpu.memory_space<vmem>>, %arg12: memref<128x128xbf16, #tpu.memory_space<vmem>>, %arg13: memref<1x128xf32, #tpu.memory_space<vmem>>, %arg14: memref<128x128xbf16, #tpu.memory_space<vmem>>, %arg15: memref<1x128xf32, #tpu.memory_space<vmem>>, %arg16: memref<128x40xbf16, #tpu.memory_space<vmem>>, %arg17: memref<1x40xf32, #tpu.memory_space<vmem>>, %arg18: memref<64x40xf32, #tpu.memory_space<vmem>>) attributes {dimension_semantics = [#tpu.dimension_semantics<parallel>], iteration_bounds = array<i64: 1>, scalar_prefetch = 0 : i64, scratch_operands = 0 : i64, tpu.core_type = #tpu.core_type<tc>, window_params = [{transform_indices = @transform_0, window_bounds = array<i64: 64, 40>}, {pipeline_mode = #tpu.pipeline_mode<synchronous>, transform_indices = @transform_1, window_bounds = array<i64: 40, 128>}, {pipeline_mode = #tpu.pipeline_mode<synchronous>, transform_indices = @transform_2, window_bounds = array<i64: 1, 128>}, {pipeline_mode = #tpu.pipeline_mode<synchronous>, transform_indices = @transform_3, window_bounds = array<i64: 128, 128>}, {pipeline_mode = #tpu.pipeline_mode<synchronous>, transform_indices = @transform_4, window_bounds = array<i64: 1, 128>}, {pipeline_mode = #tpu.pipeline_mode<synchronous>, transform_indices = @transform_5, window_bounds = array<i64: 128, 128>}, {pipeline_mode = #tpu.pipeline_mode<synchronous>, transform_indices = @transform_6, window_bounds = array<i64: 1, 128>}, {pipeline_mode = #tpu.pipeline_mode<synchronous>, transform_indices = @transform_7, window_bounds = array<i64: 128, 128>}, {pipeline_mode = #tpu.pipeline_mode<synchronous>, transform_indices = @transform_8, window_bounds = array<i64: 1, 128>}, {pipeline_mode = #tpu.pipeline_mode<synchronous>, transform_indices = @transform_9, window_bounds = array<i64: 128, 128>}, {pipeline_mode = #tpu.pipeline_mode<synchronous>, transform_indices = @transform_10, window_bounds = array<i64: 1, 128>}, {pipeline_mode = #tpu.pipeline_mode<synchronous>, transform_indices = @transform_11, window_bounds = array<i64: 128, 128>}, {pipeline_mode = #tpu.pipeline_mode<synchronous>, transform_indices = @transform_12, window_bounds = array<i64: 1, 128>}, {pipeline_mode = #tpu.pipeline_mode<synchronous>, transform_indices = @transform_13, window_bounds = array<i64: 128, 128>}, {pipeline_mode = #tpu.pipeline_mode<synchronous>, transform_indices = @transform_14, window_bounds = array<i64: 1, 128>}, {pipeline_mode = #tpu.pipeline_mode<synchronous>, transform_indices = @transform_15, window_bounds = array<i64: 128, 40>}, {pipeline_mode = #tpu.pipeline_mode<synchronous>, transform_indices = @transform_16, window_bounds = array<i64: 1, 40>}, {transform_indices = @transform_17, window_bounds = array<i64: 64, 40>}]} {
    %c0 = arith.constant 0 : index
    %c0_0 = arith.constant 0 : index
    %0 = vector.load %arg1[%c0, %c0_0] : memref<64x40xf32, #tpu.memory_space<vmem>>, vector<64x40xf32>
    %c0_1 = arith.constant 0 : index
    %c0_2 = arith.constant 0 : index
    %1 = vector.load %arg2[%c0_1, %c0_2] : memref<40x128xbf16, #tpu.memory_space<vmem>>, vector<40x128xbf16>
    %c0_3 = arith.constant 0 : index
    %c0_4 = arith.constant 0 : index
    %2 = vector.load %arg3[%c0_3, %c0_4] : memref<1x128xf32, #tpu.memory_space<vmem>>, vector<1x128xf32>
    %3 = arith.truncf %0 : vector<64x40xf32> to vector<64x40xbf16>
    %cst = arith.constant dense<0.000000e+00> : vector<64x128xf32>
    %4 = tpu.matmul %3, %1, %cst {dimension_numbers = #tpu.dot_dimension_numbers<[1], [0], [0], [1], [0, 0, 1, 1], [], []>} : vector<64x40xbf16>, vector<40x128xbf16>, vector<64x128xf32> -> vector<64x128xf32>
    %5 = vector.broadcast %2 : vector<1x128xf32> to vector<64x128xf32>
    %6 = arith.addf %4, %5 : vector<64x128xf32>
    %cst_5 = arith.constant 0.000000e+00 : f32
    %7 = vector.broadcast %cst_5 : f32 to vector<64x128xf32>
    %8 = arith.maximumf %6, %7 : vector<64x128xf32>
    %c0_6 = arith.constant 0 : index
    %c0_7 = arith.constant 0 : index
    %9 = vector.load %arg4[%c0_6, %c0_7] : memref<128x128xbf16, #tpu.memory_space<vmem>>, vector<128x128xbf16>
    %c0_8 = arith.constant 0 : index
    %c0_9 = arith.constant 0 : index
    %10 = vector.load %arg5[%c0_8, %c0_9] : memref<1x128xf32, #tpu.memory_space<vmem>>, vector<1x128xf32>
    %11 = arith.truncf %8 : vector<64x128xf32> to vector<64x128xbf16>
    %cst_10 = arith.constant dense<0.000000e+00> : vector<64x128xf32>
    %12 = tpu.matmul %11, %9, %cst_10 {dimension_numbers = #tpu.dot_dimension_numbers<[1], [0], [0], [1], [0, 0, 1, 1], [], []>} : vector<64x128xbf16>, vector<128x128xbf16>, vector<64x128xf32> -> vector<64x128xf32>
    %13 = vector.broadcast %10 : vector<1x128xf32> to vector<64x128xf32>
    %14 = arith.addf %12, %13 : vector<64x128xf32>
    %cst_11 = arith.constant 0.000000e+00 : f32
    %15 = vector.broadcast %cst_11 : f32 to vector<64x128xf32>
    %16 = arith.maximumf %14, %15 : vector<64x128xf32>
    %c0_12 = arith.constant 0 : index
    %c0_13 = arith.constant 0 : index
    %17 = vector.load %arg6[%c0_12, %c0_13] : memref<128x128xbf16, #tpu.memory_space<vmem>>, vector<128x128xbf16>
    %c0_14 = arith.constant 0 : index
    %c0_15 = arith.constant 0 : index
    %18 = vector.load %arg7[%c0_14, %c0_15] : memref<1x128xf32, #tpu.memory_space<vmem>>, vector<1x128xf32>
    %19 = arith.truncf %16 : vector<64x128xf32> to vector<64x128xbf16>
    %cst_16 = arith.constant dense<0.000000e+00> : vector<64x128xf32>
    %20 = tpu.matmul %19, %17, %cst_16 {dimension_numbers = #tpu.dot_dimension_numbers<[1], [0], [0], [1], [0, 0, 1, 1], [], []>} : vector<64x128xbf16>, vector<128x128xbf16>, vector<64x128xf32> -> vector<64x128xf32>
    %21 = vector.broadcast %18 : vector<1x128xf32> to vector<64x128xf32>
    %22 = arith.addf %20, %21 : vector<64x128xf32>
    %cst_17 = arith.constant 0.000000e+00 : f32
    %23 = vector.broadcast %cst_17 : f32 to vector<64x128xf32>
    %24 = arith.maximumf %22, %23 : vector<64x128xf32>
    %c0_18 = arith.constant 0 : index
    %c0_19 = arith.constant 0 : index
    %25 = vector.load %arg8[%c0_18, %c0_19] : memref<128x128xbf16, #tpu.memory_space<vmem>>, vector<128x128xbf16>
    %c0_20 = arith.constant 0 : index
    %c0_21 = arith.constant 0 : index
    %26 = vector.load %arg9[%c0_20, %c0_21] : memref<1x128xf32, #tpu.memory_space<vmem>>, vector<1x128xf32>
    %27 = arith.truncf %24 : vector<64x128xf32> to vector<64x128xbf16>
    %cst_22 = arith.constant dense<0.000000e+00> : vector<64x128xf32>
    %28 = tpu.matmul %27, %25, %cst_22 {dimension_numbers = #tpu.dot_dimension_numbers<[1], [0], [0], [1], [0, 0, 1, 1], [], []>} : vector<64x128xbf16>, vector<128x128xbf16>, vector<64x128xf32> -> vector<64x128xf32>
    %29 = vector.broadcast %26 : vector<1x128xf32> to vector<64x128xf32>
    %30 = arith.addf %28, %29 : vector<64x128xf32>
    %c0_23 = arith.constant 0 : index
    %c0_24 = arith.constant 0 : index
    %31 = vector.load %arg10[%c0_23, %c0_24] : memref<128x128xbf16, #tpu.memory_space<vmem>>, vector<128x128xbf16>
    %c0_25 = arith.constant 0 : index
    %c0_26 = arith.constant 0 : index
    %32 = vector.load %arg11[%c0_25, %c0_26] : memref<1x128xf32, #tpu.memory_space<vmem>>, vector<1x128xf32>
    %33 = arith.truncf %30 : vector<64x128xf32> to vector<64x128xbf16>
    %cst_27 = arith.constant dense<0.000000e+00> : vector<64x128xf32>
    %34 = tpu.matmul %33, %31, %cst_27 {dimension_numbers = #tpu.dot_dimension_numbers<[1], [0], [0], [1], [0, 0, 1, 1], [], []>} : vector<64x128xbf16>, vector<128x128xbf16>, vector<64x128xf32> -> vector<64x128xf32>
    %35 = vector.broadcast %32 : vector<1x128xf32> to vector<64x128xf32>
    %36 = arith.addf %34, %35 : vector<64x128xf32>
    %cst_28 = arith.constant 0.000000e+00 : f32
    %37 = vector.broadcast %cst_28 : f32 to vector<64x128xf32>
    %38 = arith.maximumf %36, %37 : vector<64x128xf32>
    %c0_29 = arith.constant 0 : index
    %c0_30 = arith.constant 0 : index
    %39 = vector.load %arg12[%c0_29, %c0_30] : memref<128x128xbf16, #tpu.memory_space<vmem>>, vector<128x128xbf16>
    %c0_31 = arith.constant 0 : index
    %c0_32 = arith.constant 0 : index
    %40 = vector.load %arg13[%c0_31, %c0_32] : memref<1x128xf32, #tpu.memory_space<vmem>>, vector<1x128xf32>
    %41 = arith.truncf %38 : vector<64x128xf32> to vector<64x128xbf16>
    %cst_33 = arith.constant dense<0.000000e+00> : vector<64x128xf32>
    %42 = tpu.matmul %41, %39, %cst_33 {dimension_numbers = #tpu.dot_dimension_numbers<[1], [0], [0], [1], [0, 0, 1, 1], [], []>} : vector<64x128xbf16>, vector<128x128xbf16>, vector<64x128xf32> -> vector<64x128xf32>
    %43 = vector.broadcast %40 : vector<1x128xf32> to vector<64x128xf32>
    %44 = arith.addf %42, %43 : vector<64x128xf32>
    %cst_34 = arith.constant 0.000000e+00 : f32
    %45 = vector.broadcast %cst_34 : f32 to vector<64x128xf32>
    %46 = arith.maximumf %44, %45 : vector<64x128xf32>
    %c0_35 = arith.constant 0 : index
    %c0_36 = arith.constant 0 : index
    %47 = vector.load %arg14[%c0_35, %c0_36] : memref<128x128xbf16, #tpu.memory_space<vmem>>, vector<128x128xbf16>
    %c0_37 = arith.constant 0 : index
    %c0_38 = arith.constant 0 : index
    %48 = vector.load %arg15[%c0_37, %c0_38] : memref<1x128xf32, #tpu.memory_space<vmem>>, vector<1x128xf32>
    %49 = arith.truncf %46 : vector<64x128xf32> to vector<64x128xbf16>
    %cst_39 = arith.constant dense<0.000000e+00> : vector<64x128xf32>
    %50 = tpu.matmul %49, %47, %cst_39 {dimension_numbers = #tpu.dot_dimension_numbers<[1], [0], [0], [1], [0, 0, 1, 1], [], []>} : vector<64x128xbf16>, vector<128x128xbf16>, vector<64x128xf32> -> vector<64x128xf32>
    %51 = vector.broadcast %48 : vector<1x128xf32> to vector<64x128xf32>
    %52 = arith.addf %50, %51 : vector<64x128xf32>
    %cst_40 = arith.constant 0.000000e+00 : f32
    %53 = vector.broadcast %cst_40 : f32 to vector<64x128xf32>
    %54 = arith.maximumf %52, %53 : vector<64x128xf32>
    %c0_41 = arith.constant 0 : index
    %c0_42 = arith.constant 0 : index
    %55 = vector.load %arg16[%c0_41, %c0_42] : memref<128x40xbf16, #tpu.memory_space<vmem>>, vector<128x40xbf16>
    %c0_43 = arith.constant 0 : index
    %c0_44 = arith.constant 0 : index
    %56 = vector.load %arg17[%c0_43, %c0_44] : memref<1x40xf32, #tpu.memory_space<vmem>>, vector<1x40xf32>
    %57 = arith.truncf %54 : vector<64x128xf32> to vector<64x128xbf16>
    %cst_45 = arith.constant dense<0.000000e+00> : vector<64x40xf32>
    %58 = tpu.matmul %57, %55, %cst_45 {dimension_numbers = #tpu.dot_dimension_numbers<[1], [0], [0], [1], [0, 0, 1, 1], [], []>} : vector<64x128xbf16>, vector<128x40xbf16>, vector<64x40xf32> -> vector<64x40xf32>
    %59 = vector.broadcast %56 : vector<1x40xf32> to vector<64x40xf32>
    %60 = arith.addf %58, %59 : vector<64x40xf32>
    %c0_46 = arith.constant 0 : index
    %c0_47 = arith.constant 0 : index
    %61 = vector.load %arg18[%c0_46, %c0_47] : memref<64x40xf32, #tpu.memory_space<vmem>>, vector<64x40xf32>
    tpu.vector_store %arg18[%c0_46, %c0_47], %60 {strides = array<i32>} : memref<64x40xf32, #tpu.memory_space<vmem>>, vector<64x40xf32>,
    return
  }
  func.func @transform_0(%arg0: i32) -> (i32, i32) {
    %c0_i32 = arith.constant 0 : i32
    %c0_i32_0 = arith.constant 0 : i32
    return %arg0, %c0_i32 : i32, i32
  }
  func.func @transform_1(%arg0: i32) -> (i32, i32) {
    %c0_i32 = arith.constant 0 : i32
    %c0_i32_0 = arith.constant 0 : i32
    %c0_i32_1 = arith.constant 0 : i32
    return %c0_i32, %c0_i32_0 : i32, i32
  }
  func.func @transform_2(%arg0: i32) -> (i32, i32) {
    %c0_i32 = arith.constant 0 : i32
    %c0_i32_0 = arith.constant 0 : i32
    %c0_i32_1 = arith.constant 0 : i32
    return %c0_i32, %c0_i32_0 : i32, i32
  }
  func.func @transform_3(%arg0: i32) -> (i32, i32) {
    %c0_i32 = arith.constant 0 : i32
    %c0_i32_0 = arith.constant 0 : i32
    %c0_i32_1 = arith.constant 0 : i32
    return %c0_i32, %c0_i32_0 : i32, i32
  }
  func.func @transform_4(%arg0: i32) -> (i32, i32) {
    %c0_i32 = arith.constant 0 : i32
    %c0_i32_0 = arith.constant 0 : i32
    %c0_i32_1 = arith.constant 0 : i32
    return %c0_i32, %c0_i32_0 : i32, i32
  }
  func.func @transform_5(%arg0: i32) -> (i32, i32) {
    %c0_i32 = arith.constant 0 : i32
    %c0_i32_0 = arith.constant 0 : i32
    %c0_i32_1 = arith.constant 0 : i32
    return %c0_i32, %c0_i32_0 : i32, i32
  }
  func.func @transform_6(%arg0: i32) -> (i32, i32) {
    %c0_i32 = arith.constant 0 : i32
    %c0_i32_0 = arith.constant 0 : i32
    %c0_i32_1 = arith.constant 0 : i32
    return %c0_i32, %c0_i32_0 : i32, i32
  }
  func.func @transform_7(%arg0: i32) -> (i32, i32) {
    %c0_i32 = arith.constant 0 : i32
    %c0_i32_0 = arith.constant 0 : i32
    %c0_i32_1 = arith.constant 0 : i32
    return %c0_i32, %c0_i32_0 : i32, i32
  }
  func.func @transform_8(%arg0: i32) -> (i32, i32) {
    %c0_i32 = arith.constant 0 : i32
    %c0_i32_0 = arith.constant 0 : i32
    %c0_i32_1 = arith.constant 0 : i32
    return %c0_i32, %c0_i32_0 : i32, i32
  }
  func.func @transform_9(%arg0: i32) -> (i32, i32) {
    %c0_i32 = arith.constant 0 : i32
    %c0_i32_0 = arith.constant 0 : i32
    %c0_i32_1 = arith.constant 0 : i32
    return %c0_i32, %c0_i32_0 : i32, i32
  }
  func.func @transform_10(%arg0: i32) -> (i32, i32) {
    %c0_i32 = arith.constant 0 : i32
    %c0_i32_0 = arith.constant 0 : i32
    %c0_i32_1 = arith.constant 0 : i32
    return %c0_i32, %c0_i32_0 : i32, i32
  }
  func.func @transform_11(%arg0: i32) -> (i32, i32) {
    %c0_i32 = arith.constant 0 : i32
    %c0_i32_0 = arith.constant 0 : i32
    %c0_i32_1 = arith.constant 0 : i32
    return %c0_i32, %c0_i32_0 : i32, i32
  }
  func.func @transform_12(%arg0: i32) -> (i32, i32) {
    %c0_i32 = arith.constant 0 : i32
    %c0_i32_0 = arith.constant 0 : i32
    %c0_i32_1 = arith.constant 0 : i32
    return %c0_i32, %c0_i32_0 : i32, i32
  }
  func.func @transform_13(%arg0: i32) -> (i32, i32) {
    %c0_i32 = arith.constant 0 : i32
    %c0_i32_0 = arith.constant 0 : i32
    %c0_i32_1 = arith.constant 0 : i32
    return %c0_i32, %c0_i32_0 : i32, i32
  }
  func.func @transform_14(%arg0: i32) -> (i32, i32) {
    %c0_i32 = arith.constant 0 : i32
    %c0_i32_0 = arith.constant 0 : i32
    %c0_i32_1 = arith.constant 0 : i32
    return %c0_i32, %c0_i32_0 : i32, i32
  }
  func.func @transform_15(%arg0: i32) -> (i32, i32) {
    %c0_i32 = arith.constant 0 : i32
    %c0_i32_0 = arith.constant 0 : i32
    %c0_i32_1 = arith.constant 0 : i32
    return %c0_i32, %c0_i32_0 : i32, i32
  }
  func.func @transform_16(%arg0: i32) -> (i32, i32) {
    %c0_i32 = arith.constant 0 : i32
    %c0_i32_0 = arith.constant 0 : i32
    %c0_i32_1 = arith.constant 0 : i32
    return %c0_i32, %c0_i32_0 : i32, i32
  }
  func.func @transform_17(%arg0: i32) -> (i32, i32) {
    %c0_i32 = arith.constant 0 : i32
    %c0_i32_0 = arith.constant 0 : i32
    return %arg0, %c0_i32 : i32, i32
  }
}

</mosaic_0001>

<bundles_post_ra>
// kernel: tpu_custom_call.1
= control target key start
LH: loop header
LB: loop body
LE: loop exit
PB: predicated region body
PF: predicated region fallthrough
CT: control target
= control target key end

     0   :  { %s1791_s0 = inlined_call_operand.vmem [shape: f32[64,40], index: 0, kind: input, shape index: {}]   ;;  %s1792_s1 = inlined_call_operand.hbm [shape: bf16[40,128], index: 1, kind: input, shape index: {}]   ;;  %s1793_s2 = inlined_call_operand.vmem [shape: f32[1,128], index: 2, kind: input, shape index: {}]   ;;  %s1794_s3 = inlined_call_operand.vmem [shape: bf16[128,128], index: 3, kind: input, shape index: {}]   ;;  %s1795_s4 = inlined_call_operand.hbm [shape: f32[1,128], index: 4, kind: input, shape index: {}]   ;;  %s1796_s5 = inlined_call_operand.vmem [shape: bf16[128,128], index: 5, kind: input, shape index: {}]   ;;  %s1797_s6 = inlined_call_operand.hbm [shape: f32[1,128], index: 6, kind: input, shape index: {}]   ;;  %s1798_s7 = inlined_call_operand.vmem [shape: bf16[128,128], index: 7, kind: input, shape index: {}]   ;;  %s1799_s8 = inlined_call_operand.hbm [shape: f32[1,128], index: 8, kind: input, shape index: {}]   ;;  %s1800_s9 = inlined_call_operand.hbm [shape: bf16[128,128], index: 9, kind: input, shape index: {}]   ;;  %s1801_s10 = inlined_call_operand.vmem [shape: f32[1,128], index: 10, kind: input, shape index: {}]   ;;  %s1802_s11 = inlined_call_operand.hbm [shape: bf16[128,128], index: 11, kind: input, shape index: {}]   ;;  %s1803_s12 = inlined_call_operand.vmem [shape: f32[1,128], index: 12, kind: input, shape index: {}]   ;;  %s1804_s13 = inlined_call_operand.hbm [shape: bf16[128,128], index: 13, kind: input, shape index: {}]   ;;  %s1805_s14 = inlined_call_operand.vmem [shape: f32[1,128], index: 14, kind: input, shape index: {}]   ;;  %s1806_s15 = inlined_call_operand.vmem [shape: bf16[128,40], index: 15, kind: input, shape index: {}]   ;;  %s1807_s16 = inlined_call_operand.vmem [shape: f32[1,40], index: 16, kind: input, shape index: {}]   ;;  %s1808_s17 = inlined_call_operand.vmem [shape: f32[64,40], index: 17, kind: output, shape index: {}]  }
   0x1   :  { %1810 = sst [smem:[#allocation17_spill]] %s1791_s0 }
   0x2   :  { %1811 = sst [smem:[#allocation18_spill]] %s1792_s1 }
   0x3   :  { %22 = vsyncpa [#allocation3], 0 }
   0x4   :  { %23 = vsyncpa [#allocation5], 0 }
   0x5   :  { %24 = vsyncpa [#allocation8], 0  ;;  %s50_s26 = sshll.u32 %s1795_s4, 4  ;;  %s51_s26 = int_to_ptr.hbm [resolvable:$true] %s50_s26 }
   0x6   :  { %25 = vsyncpa [#allocation11], 0  ;;  %s1500_s27 = smov [#allocation4]   ;;  %s76_s30 = sshll.u32 %s1799_s8, 4  ;;  %s77_s30 = int_to_ptr.hbm [resolvable:$true] %s76_s30 }
   0x7   :  { %s52_s28 = sshll.u32 %s1500_s27, 4  ;;  %s1501_s18 = smov [#allocation7]   ;;  %s53_s28 = int_to_ptr.vmem [resolvable:$true] %s52_s28 }
   0x8   :  { %55 = dma.hbm_to_vmem [thread:$0]  %s51_s26, 16, %s53_s28, [#allocation5]  }
   0x9   :  { %s78_s19 = sshll.u32 %s1501_s18, 4  ;;  %s101_s21 = sshll.u32 %s1802_s11, 4  ;;  %s79_s19 = int_to_ptr.vmem [resolvable:$true] %s78_s19  ;;  %s102_s21 = int_to_ptr.hbm [resolvable:$true] %s101_s21 }
   0xa   :  { %81 = dma.hbm_to_vmem [thread:$0]  %s77_s30, 16, %s79_s19, [#allocation8]  }
   0xb   :  { %s1502_s4 = smov [#allocation10]   ;;  %s1812_s25 = sld [smem:[#allocation18_spill]] }
   0xc   :  { %s103_s22 = sshll.u32 %s1502_s4, 4  ;;  %s1503_s29 = smov 64   ;;  %s104_s22 = int_to_ptr.vmem [resolvable:$true] %s103_s22 }
   0xd   :  { %s1504_s8 = smov 4   ;;  %s1505_s26 = smov [#allocation2]  }
   0xe   :  { %109 = dma.hbm_to_vmem [thread:$0]  %s102_s21, 1024, %s104_s22, [#allocation11], %s1503_s29, %s1503_s29, %s1504_s8  }
   0xf   :  { %s34_s28 = sshll.u32 %s1505_s26, 4  ;;  %s63_s18 = sshll.u32 %s1797_s6, 4  ;;  %s35_s28 = int_to_ptr.vmem [resolvable:$true] %s34_s28  ;;  %s64_s18 = int_to_ptr.hbm [resolvable:$true] %s63_s18 }
  0x10   :  { %s86_s1 = sshll.u32 %s1800_s9, 4  ;;  %s1506_s20 = smov [#allocation6]   ;;  %s87_s1 = int_to_ptr.hbm [resolvable:$true] %s86_s1 }
  0x11   :  { %s32_s27 = sshll.u32 %s1812_s25, 4  ;;  %s65_s4 = sshll.u32 %s1506_s20, 4  ;;  %s33_s27 = int_to_ptr.hbm [resolvable:$true] %s32_s27  ;;  %s66_s4 = int_to_ptr.vmem [resolvable:$true] %s65_s4 }
  0x12   :  { %40 = dma.hbm_to_vmem [thread:$0]  %s33_s27, 320, %s35_s28, [#allocation3], %s1503_s29, %s1503_s29, %s1504_s8  }
  0x13   :  { %68 = dma.hbm_to_vmem [thread:$0]  %s64_s18, 16, %s66_s4, [#allocation5]  }
  0x14   :  { %s1507_s21 = smov [#allocation9]   ;;  %s116_s25 = sshll.u32 %s1804_s13, 4  ;;  %s117_s25 = int_to_ptr.hbm [resolvable:$true] %s116_s25 }
  0x15   :  { %s88_s22 = sshll.u32 %s1507_s21, 4  ;;  %s1508_s6 = smov [#allocation12]   ;;  %s89_s22 = int_to_ptr.vmem [resolvable:$true] %s88_s22 }
  0x16   :  { %94 = dma.hbm_to_vmem [thread:$0]  %s87_s1, 1024, %s89_s22, [#allocation8], %s1503_s29, %s1503_s29, %s1504_s8  }
  0x17   :  { %s118_s27 = sshll.u32 %s1508_s6, 4  ;;  %s119_s27 = int_to_ptr.vmem [resolvable:$true] %s118_s27 }
  0x18   :  { %124 = dma.hbm_to_vmem [thread:$0]  %s117_s25, 1024, %s119_s27, [#allocation11], %s1503_s29, %s1503_s29, %s1504_s8  }
  0x19   :  { %1492 = dma.done.wait [#allocation3], 320  }
  0x1a   :  { %1493 = vsyncadd [#allocation3], 4294966976 }
  0x1b   :  { %1494 = dma.done.wait [#allocation5], 32  }
  0x1c   :  { %1495 = vsyncadd [#allocation5], 4294967264 }
  0x1d   :  { %1496 = dma.done.wait [#allocation8], 1040  }
  0x1e   :  { %1497 = vsyncadd [#allocation8], 4294966256 }
  0x1f   :  { %1498 = dma.done.wait [#allocation11], 2048  }
  0x20   :  { %1499 = vsyncadd [#allocation11], 4294965248  ;;  %v172_v0 = vld [vmem:[#allocation2 + $0x10] sm:$0xf]  ;;  %vm209_vm0 = vcmask 1043456   ;;  %v1250_v4 = vld [vmem:[#allocation2 + $0x8] sm:$0xff] }
  0x21   :  { %v190_v1 = vunpack.c.l.b16 %v172_v0  ;;  %v1249_v5 = vld [vmem:[#allocation2] sm:$0xff]  ;;  %s1813_s29 = sld [smem:[#allocation17_spill]]  ;;  %vm196_vm1 = vcmask 326656   ;;  %v1258_v12 = vld [vmem:[%s1794_s3 + $0x38] sm:$0xff]  ;;  %v1257_v13 = vld [vmem:[%s1794_s3 + $0x30] sm:$0xff] }
  0x22   :  { %322 = vmatpush.bf16.msra.mxu1 %v1258_v12  ;;  %v1256_v14 = vld [vmem:[%s1794_s3 + $0x28] sm:$0xff]  ;;  %v1255_v17 = vld [vmem:[%s1794_s3 + $0x20] sm:$0xff]  ;;  %v1254_v22 = vld [vmem:[%s1794_s3 + $0x18] sm:$0xff] }
  0x23   :  { %v193_v2 = vpack.c.b16 %v190_v1, %v190_v1  ;;  %v1253_v23 = vld [vmem:[%s1794_s3 + $0x10] sm:$0xff]  ;;  %v1252_v24 = vld [vmem:[%s1794_s3 + $0x8] sm:$0xff]  ;;  %v1251_v25 = vld [vmem:[%s1794_s3] sm:$0xff] }
  0x24   :  { %v1316_v27 = vld [vmem:[%s1793_s2] ss:$0 sm:$0xff]  ;;  %v1266_v41 = vld [vmem:[%s1796_s5 + $0x38] sm:$0xff]  ;;  %v1265_v43 = vld [vmem:[%s1796_s5 + $0x30] sm:$0xff] }
  0x25   :  { %v211_v3 = vsel %vm209_vm0, %v193_v2, 0  ;;  %431 = vmatpush.bf16.msra.mxu2 %v1266_v41  ;;  %v1264_v44 = vld [vmem:[%s1796_s5 + $0x28] sm:$0xff]  ;;  %v1263_v48 = vld [vmem:[%s1796_s5 + $0x20] sm:$0xff]  ;;  %v1262_v59 = vld [vmem:[%s1796_s5 + $0x18] sm:$0xff] }
  0x26   :  { %218 = vmatpush.bf16.msra.mxu0 %v211_v3  ;;  %323 = vmatpush.bf16.msra.mxu1 %v1257_v13  ;;  %v1261_v60 = vld [vmem:[%s1796_s5 + $0x10] sm:$0xff]  ;;  %v1260_v61 = vld [vmem:[%s1796_s5 + $0x8] sm:$0xff]  ;;  %v1259_v62 = vld [vmem:[%s1796_s5] sm:$0xff] }
  0x27   :  { %v160_v6 = vld [vmem:[%s1813_s29] sm:$0xff]  ;;  %v161_v7 = vld [vmem:[%s1813_s29 + $0x8] sm:$0xff]  ;;  %v162_v9 = vld [vmem:[%s1813_s29 + $0x10] sm:$0xff] }
  0x28   :  { %v174_v8 = vpack.c.bf16 %v161_v7, %v160_v6  ;;  %v163_v10 = vld [vmem:[%s1813_s29 + $0x18] sm:$0xff]  ;;  %v164_v15 = vld [vmem:[%s1813_s29 + $0x20] sm:$0xff]  ;;  %v165_v16 = vld [vmem:[%s1813_s29 + $0x28] sm:$0xff] }
  0x29   :  { %v175_v11 = vpack.c.bf16 %v163_v10, %v162_v9  ;;  %v176_v18 = vpack.c.bf16 %v165_v16, %v164_v15  ;;  %v166_v19 = vld [vmem:[%s1813_s29 + $0x30] sm:$0xff]  ;;  %v167_v20 = vld [vmem:[%s1813_s29 + $0x38] sm:$0xff]  ;;  %432 = vmatpush.bf16.msra.mxu2 %v1265_v43 }
  0x2a   :  { %219 = vmatpush.bf16.msra.mxu0 %v1250_v4  ;;  %324 = vmatpush.bf16.msra.mxu1 %v1256_v14  ;;  %v177_v21 = vpack.c.bf16 %v167_v20, %v166_v19  ;;  %v1317_v0 = vld [vmem:[#allocation4] ss:$0 sm:$0xff]  ;;  %v1274_v14 = vld [vmem:[%s1798_s7 + $0x38] sm:$0xff] }
  0x2b   :  { %540 = vmatpush.bf16.msra.mxu3 %v1274_v14  ;;  %v1273_v16 = vld [vmem:[%s1798_s7 + $0x30] sm:$0xff] }
  0x2d   :  { %433 = vmatpush.bf16.msra.mxu2 %v1264_v44 }
  0x2e   :  { %220 = vmatpush.bf16.msra.mxu0 %v1249_v5  ;;  %325 = vmatpush.bf16.msra.mxu1 %v1255_v17  ;;  %v1272_v17 = vld [vmem:[%s1798_s7 + $0x28] sm:$0xff] }
  0x2f   :  { %541 = vmatpush.bf16.msra.mxu3 %v1273_v16 }
  0x31   :  { %1021 = vmatmul.msk.bf16.vlgmr.msra.gmra.mxu0 %vm196_vm1, %v174_v8  ;;  %434 = vmatpush.bf16.msra.mxu2 %v1263_v48 }
  0x32   :  { %326 = vmatpush.bf16.msra.mxu1 %v1254_v22 }
  0x33   :  { %542 = vmatpush.bf16.msra.mxu3 %v1272_v17 }
  0x35   :  { %435 = vmatpush.bf16.msra.mxu2 %v1262_v59 }
  0x36   :  { %327 = vmatpush.bf16.msra.mxu1 %v1253_v23 }
  0x39   :  { %436 = vmatpush.bf16.msra.mxu2 %v1261_v60 }
  0x3a   :  { %328 = vmatpush.bf16.msra.mxu1 %v1252_v24 }
  0x3d   :  { %437 = vmatpush.bf16.msra.mxu2 %v1260_v61 }
  0x3e   :  { %329 = vmatpush.bf16.msra.mxu1 %v1251_v25 }
  0x41   :  { %1022 = vmatmul.msk.bf16.gmra.mxu0 %vm196_vm1, %v175_v11  ;;  %438 = vmatpush.bf16.msra.mxu2 %v1259_v62  ;;  %v1278_v62 = vld [vmem:[#allocation9 + $0x18] sm:$0xff] }
  0x51   :  { %1023 = vmatmul.msk.bf16.gmra.mxu0 %vm196_vm1, %v176_v18 }
  0x61   :  { %1024 = vmatmul.msk.bf16.gmra.mxu0 %vm196_vm1, %v177_v21  ;;  %v1271_v21 = vld [vmem:[%s1798_s7 + $0x20] sm:$0xff] }
  0x62   :  { %543 = vmatpush.bf16.msra.mxu3 %v1271_v21  ;;  %v1289_v21 = vld [vmem:[#allocation10 + $0x30] sm:$0xff] }
  0xae   :  { %v222_v26 = vpop.f32.mrf.mxu0 }
  0xaf   :  { %v223_v28 = vadd.f32 %v1316_v27, %v222_v26 }
  0xb1   :  { %v242_v31 = vmax.f32 %v223_v28, 0.0 }
  0xb6   :  { %v224_v29 = vpop.f32.mrf.mxu0 }
  0xb7   :  { %v225_v30 = vadd.f32 %v1316_v27, %v224_v29 }
  0xb9   :  { %v243_v32 = vmax.f32 %v225_v30, 0.0 }
  0xbb   :  { %v267_v33 = vpack.c.bf16 %v243_v32, %v242_v31  ;;  %v1270_v32 = vld [vmem:[%s1798_s7 + $0x18] sm:$0xff] }
  0xbc   :  { %544 = vmatpush.bf16.msra.mxu3 %v1270_v32  ;;  %v1284_v32 = vld [vmem:[#allocation10 + $0x8] sm:$0xff] }
  0xbd   :  { %330 = vmatmul.bf16.vlgmr.msra.gmra.mxu1 %v267_v33  ;;  %v1269_v33 = vld [vmem:[%s1798_s7 + $0x10] sm:$0xff] }
  0xbe   :  { %v227_v34 = vpop.f32.mrf.mxu0 }
  0xbf   :  { %v228_v35 = vadd.f32 %v1316_v27, %v227_v34  ;;  %v1268_v34 = vld [vmem:[%s1798_s7 + $0x8] sm:$0xff] }
  0xc0   :  { %545 = vmatpush.bf16.msra.mxu3 %v1269_v33 }
  0xc1   :  { %v244_v38 = vmax.f32 %v228_v35, 0.0  ;;  %v1267_v35 = vld [vmem:[%s1798_s7] sm:$0xff] }
  0xc4   :  { %546 = vmatpush.bf16.msra.mxu3 %v1268_v34 }
  0xc6   :  { %v229_v36 = vpop.f32.mrf.mxu0 }
  0xc7   :  { %v230_v37 = vadd.f32 %v1316_v27, %v229_v36 }
  0xc8   :  { %547 = vmatpush.bf16.msra.mxu3 %v1267_v35 }
  0xc9   :  { %v245_v39 = vmax.f32 %v230_v37, 0.0  ;;  %v1318_v37 = vld [vmem:[#allocation6] ss:$0 sm:$0xff] }
  0xcb   :  { %v268_v40 = vpack.c.bf16 %v245_v39, %v244_v38 }
  0xcd   :  { %335 = vmatmul.bf16.gmra.mxu1 %v268_v40 }
  0xce   :  { %v232_v42 = vpop.f32.mrf.mxu0 }
  0xcf   :  { %v233_v45 = vadd.f32 %v1316_v27, %v232_v42 }
  0xd1   :  { %v246_v49 = vmax.f32 %v233_v45, 0.0 }
  0xd6   :  { %v234_v46 = vpop.f32.mrf.mxu0 }
  0xd7   :  { %v235_v47 = vadd.f32 %v1316_v27, %v234_v46 }
  0xd9   :  { %v247_v50 = vmax.f32 %v235_v47, 0.0 }
  0xdb   :  { %v269_v51 = vpack.c.bf16 %v247_v50, %v246_v49 }
  0xdd   :  { %340 = vmatmul.bf16.gmra.mxu1 %v269_v51  ;;  %v1282_v51 = vld [vmem:[#allocation9 + $0x38] sm:$0xff] }
  0xde   :  { %v237_v52 = vpop.f32.mrf.mxu0  ;;  %641 = vmatpush.bf16.msrb.mxu0 %v1282_v51 }
  0xdf   :  { %v238_v53 = vadd.f32 %v1316_v27, %v237_v52 }
  0xe1   :  { %v248_v56 = vmax.f32 %v238_v53, 0.0  ;;  %v1281_v53 = vld [vmem:[#allocation9 + $0x30] sm:$0xff] }
  0xe2   :  { %642 = vmatpush.bf16.msrb.mxu0 %v1281_v53  ;;  %v1298_v53 = vld [vmem:[#allocation12 + $0x38] sm:$0xff] }
  0xe3   :  { %859 = vmatpush.bf16.msrb.mxu2 %v1298_v53 }
  0xe6   :  { %v239_v54 = vpop.f32.mrf.mxu0 }
  0xe7   :  { %v240_v55 = vadd.f32 %v1316_v27, %v239_v54  ;;  %v1280_v54 = vld [vmem:[#allocation9 + $0x28] sm:$0xff] }
  0xe8   :  { %643 = vmatpush.bf16.msrb.mxu0 %v1280_v54 }
  0xe9   :  { %v249_v57 = vmax.f32 %v240_v55, 0.0 }
  0xeb   :  { %v270_v58 = vpack.c.bf16 %v249_v57, %v248_v56 }
  0xed   :  { %345 = vmatmul.bf16.gmra.mxu1 %v270_v58  ;;  %v1279_v58 = vld [vmem:[#allocation9 + $0x20] sm:$0xff] }
  0xee   :  { %644 = vmatpush.bf16.msrb.mxu0 %v1279_v58 }
  0xf2   :  { %645 = vmatpush.bf16.msrb.mxu0 %v1278_v62 }
 0x13a   :  { %v331_v63 = vpop.f32.mrf.mxu1 }
 0x13b   :  { %v332_v1 = vadd.f32 %v1317_v0, %v331_v63 }
 0x13d   :  { %v351_v4 = vmax.f32 %v332_v1, 0.0  ;;  %v1276_v1 = vld [vmem:[#allocation9 + $0x8] sm:$0xff] }
 0x142   :  { %v333_v2 = vpop.f32.mrf.mxu1 }
 0x143   :  { %v334_v3 = vadd.f32 %v1317_v0, %v333_v2 }
 0x145   :  { %v352_v5 = vmax.f32 %v334_v3, 0.0 }
 0x147   :  { %v376_v6 = vpack.c.bf16 %v352_v5, %v351_v4 }
 0x149   :  { %439 = vmatmul.bf16.vlgmr.msra.gmra.mxu2 %v376_v6 }
 0x14a   :  { %v336_v7 = vpop.f32.mrf.mxu1 }
 0x14b   :  { %v337_v8 = vadd.f32 %v1317_v0, %v336_v7 }
 0x14d   :  { %v353_v11 = vmax.f32 %v337_v8, 0.0  ;;  %v1275_v8 = vld [vmem:[#allocation9] sm:$0xff] }
 0x152   :  { %v338_v9 = vpop.f32.mrf.mxu1 }
 0x153   :  { %v339_v10 = vadd.f32 %v1317_v0, %v338_v9 }
 0x155   :  { %v354_v12 = vmax.f32 %v339_v10, 0.0  ;;  %v1319_v10 = vld [vmem:[#allocation7] ss:$0 sm:$0xff] }
 0x157   :  { %v377_v13 = vpack.c.bf16 %v354_v12, %v353_v11 }
 0x159   :  { %444 = vmatmul.bf16.gmra.mxu2 %v377_v13 }
 0x15a   :  { %v341_v15 = vpop.f32.mrf.mxu1 }
 0x15b   :  { %v342_v18 = vadd.f32 %v1317_v0, %v341_v15 }
 0x15d   :  { %v355_v22 = vmax.f32 %v342_v18, 0.0 }
 0x162   :  { %v343_v19 = vpop.f32.mrf.mxu1 }
 0x163   :  { %v344_v20 = vadd.f32 %v1317_v0, %v343_v19 }
 0x165   :  { %v356_v23 = vmax.f32 %v344_v20, 0.0  ;;  %v1290_v20 = vld [vmem:[#allocation10 + $0x38] sm:$0xff] }
 0x166   :  { %750 = vmatpush.bf16.msrb.mxu1 %v1290_v20 }
 0x167   :  { %v378_v24 = vpack.c.bf16 %v356_v23, %v355_v22  ;;  %v1288_v23 = vld [vmem:[#allocation10 + $0x28] sm:$0xff] }
 0x169   :  { %449 = vmatmul.bf16.gmra.mxu2 %v378_v24  ;;  %v1287_v24 = vld [vmem:[#allocation10 + $0x20] sm:$0xff] }
 0x16a   :  { %v346_v25 = vpop.f32.mrf.mxu1  ;;  %751 = vmatpush.bf16.msrb.mxu1 %v1289_v21 }
 0x16b   :  { %v347_v26 = vadd.f32 %v1317_v0, %v346_v25 }
 0x16d   :  { %v357_v29 = vmax.f32 %v347_v26, 0.0 }
 0x16e   :  { %752 = vmatpush.bf16.msrb.mxu1 %v1288_v23 }
 0x172   :  { %v348_v27 = vpop.f32.mrf.mxu1  ;;  %753 = vmatpush.bf16.msrb.mxu1 %v1287_v24 }
 0x173   :  { %v349_v28 = vadd.f32 %v1317_v0, %v348_v27  ;;  %v1277_v0 = vld [vmem:[#allocation9 + $0x10] sm:$0xff] }
 0x174   :  { %646 = vmatpush.bf16.msrb.mxu0 %v1277_v0  ;;  %v1294_v0 = vld [vmem:[#allocation12 + $0x18] sm:$0xff] }
 0x175   :  { %v358_v30 = vmax.f32 %v349_v28, 0.0 }
 0x177   :  { %v379_v31 = vpack.c.bf16 %v358_v30, %v357_v29  ;;  %v1286_v29 = vld [vmem:[#allocation10 + $0x18] sm:$0xff]  ;;  %v1285_v30 = vld [vmem:[#allocation10 + $0x10] sm:$0xff] }
 0x178   :  { %647 = vmatpush.bf16.msrb.mxu0 %v1276_v1  ;;  %754 = vmatpush.bf16.msrb.mxu1 %v1286_v29  ;;  %v1304_v29 = vld [vmem:[%s1806_s15 + $0x28] sm:$0xff] }
 0x179   :  { %454 = vmatmul.bf16.gmra.mxu2 %v379_v31 }
 0x17c   :  { %648 = vmatpush.bf16.msrb.mxu0 %v1275_v8  ;;  %755 = vmatpush.bf16.msrb.mxu1 %v1285_v30 }
 0x180   :  { %756 = vmatpush.bf16.msrb.mxu1 %v1284_v32 }
 0x1cc   :  { %v440_v36 = vpop.f32.mrf.mxu2 }
 0x1cd   :  { %v441_v38 = vadd.f32 %v1318_v37, %v440_v36 }
 0x1cf   :  { %v460_v41 = vmax.f32 %v441_v38, 0.0 }
 0x1d4   :  { %v442_v39 = vpop.f32.mrf.mxu2 }
 0x1d5   :  { %v443_v40 = vadd.f32 %v1318_v37, %v442_v39  ;;  %v1320_v39 = vld [vmem:[%s1801_s10] ss:$0 sm:$0xff] }
 0x1d7   :  { %v461_v42 = vmax.f32 %v443_v40, 0.0 }
 0x1d9   :  { %v485_v43 = vpack.c.bf16 %v461_v42, %v460_v41 }
 0x1db   :  { %548 = vmatmul.bf16.vlgmr.msra.gmra.mxu3 %v485_v43 }
 0x1dc   :  { %v445_v44 = vpop.f32.mrf.mxu2 }
 0x1dd   :  { %v446_v45 = vadd.f32 %v1318_v37, %v445_v44 }
 0x1df   :  { %v462_v48 = vmax.f32 %v446_v45, 0.0 }
 0x1e4   :  { %v447_v46 = vpop.f32.mrf.mxu2 }
 0x1e5   :  { %v448_v47 = vadd.f32 %v1318_v37, %v447_v46 }
 0x1e7   :  { %v463_v49 = vmax.f32 %v448_v47, 0.0 }
 0x1e9   :  { %v486_v50 = vpack.c.bf16 %v463_v49, %v462_v48 }
 0x1eb   :  { %553 = vmatmul.bf16.gmra.mxu3 %v486_v50 }
 0x1ec   :  { %v450_v52 = vpop.f32.mrf.mxu2 }
 0x1ed   :  { %v451_v55 = vadd.f32 %v1318_v37, %v450_v52 }
 0x1ef   :  { %v464_v59 = vmax.f32 %v451_v55, 0.0  ;;  %v1297_v55 = vld [vmem:[#allocation12 + $0x30] sm:$0xff] }
 0x1f0   :  { %860 = vmatpush.bf16.msrb.mxu2 %v1297_v55 }
 0x1f4   :  { %v452_v56 = vpop.f32.mrf.mxu2 }
 0x1f5   :  { %v453_v57 = vadd.f32 %v1318_v37, %v452_v56  ;;  %v1296_v56 = vld [vmem:[#allocation12 + $0x28] sm:$0xff] }
 0x1f6   :  { %861 = vmatpush.bf16.msrb.mxu2 %v1296_v56 }
 0x1f7   :  { %v465_v60 = vmax.f32 %v453_v57, 0.0 }
 0x1f9   :  { %v487_v61 = vpack.c.bf16 %v465_v60, %v464_v59  ;;  %v1295_v60 = vld [vmem:[#allocation12 + $0x20] sm:$0xff] }
 0x1fa   :  { %862 = vmatpush.bf16.msrb.mxu2 %v1295_v60 }
 0x1fb   :  { %558 = vmatmul.bf16.gmra.mxu3 %v487_v61 }
 0x1fc   :  { %v455_v63 = vpop.f32.mrf.mxu2 }
 0x1fd   :  { %v456_v2 = vadd.f32 %v1318_v37, %v455_v63 }
 0x1fe   :  { %863 = vmatpush.bf16.msrb.mxu2 %v1294_v0 }
 0x1ff   :  { %v466_v5 = vmax.f32 %v456_v2, 0.0  ;;  %v1293_v2 = vld [vmem:[#allocation12 + $0x10] sm:$0xff] }
 0x202   :  { %864 = vmatpush.bf16.msrb.mxu2 %v1293_v2 }
 0x204   :  { %v457_v3 = vpop.f32.mrf.mxu2 }
 0x205   :  { %v458_v4 = vadd.f32 %v1318_v37, %v457_v3  ;;  %v1283_v37 = vld [vmem:[#allocation10] sm:$0xff]  ;;  %v1292_v3 = vld [vmem:[#allocation12 + $0x8] sm:$0xff] }
 0x206   :  { %757 = vmatpush.bf16.msrb.mxu1 %v1283_v37  ;;  %865 = vmatpush.bf16.msrb.mxu2 %v1292_v3  ;;  %v1302_v37 = vld [vmem:[%s1806_s15 + $0x18] sm:$0xff] }
 0x207   :  { %v467_v6 = vmax.f32 %v458_v4, 0.0 }
 0x209   :  { %v488_v7 = vpack.c.bf16 %v467_v6, %v466_v5 }
 0x20b   :  { %563 = vmatmul.bf16.gmra.mxu3 %v488_v7 }
 0x25e   :  { %v549_v9 = vpop.f32.mrf.mxu3 }
 0x25f   :  { %v550_v12 = vadd.f32 %v1319_v10, %v549_v9 }
 0x266   :  { %v551_v11 = vpop.f32.mrf.mxu3 }
 0x267   :  { %v552_v13 = vadd.f32 %v1319_v10, %v551_v11 }
 0x269   :  { %v586_v14 = vpack.c.bf16 %v552_v13, %v550_v12  ;;  %v1321_v12 = vld [vmem:[%s1803_s12] ss:$0 sm:$0xff] }
 0x26b   :  { %649 = vmatmul.bf16.vlgmr.msrb.gmra.mxu0 %v586_v14 }
 0x26e   :  { %v554_v15 = vpop.f32.mrf.mxu3 }
 0x26f   :  { %v555_v17 = vadd.f32 %v1319_v10, %v554_v15 }
 0x276   :  { %v556_v16 = vpop.f32.mrf.mxu3 }
 0x277   :  { %v557_v18 = vadd.f32 %v1319_v10, %v556_v16 }
 0x279   :  { %v587_v19 = vpack.c.bf16 %v557_v18, %v555_v17 }
 0x27b   :  { %654 = vmatmul.bf16.gmra.mxu0 %v587_v19 }
 0x27e   :  { %v559_v22 = vpop.f32.mrf.mxu3 }
 0x27f   :  { %v560_v26 = vadd.f32 %v1319_v10, %v559_v22 }
 0x286   :  { %v561_v25 = vpop.f32.mrf.mxu3 }
 0x287   :  { %v562_v27 = vadd.f32 %v1319_v10, %v561_v25 }
 0x289   :  { %v588_v28 = vpack.c.bf16 %v562_v27, %v560_v26  ;;  %v1306_v26 = vld [vmem:[%s1806_s15 + $0x38] sm:$0xff] }
 0x28a   :  { %968 = vmatpush.bf16.msrb.mxu3 %v1306_v26 }
 0x28b   :  { %659 = vmatmul.bf16.gmra.mxu0 %v588_v28  ;;  %v1305_v28 = vld [vmem:[%s1806_s15 + $0x30] sm:$0xff] }
 0x28e   :  { %v564_v31 = vpop.f32.mrf.mxu3  ;;  %969 = vmatpush.bf16.msrb.mxu3 %v1305_v28 }
 0x28f   :  { %v565_v34 = vadd.f32 %v1319_v10, %v564_v31 }
 0x292   :  { %970 = vmatpush.bf16.msrb.mxu3 %v1304_v29 }
 0x296   :  { %v566_v33 = vpop.f32.mrf.mxu3 }
 0x297   :  { %v567_v35 = vadd.f32 %v1319_v10, %v566_v33  ;;  %v1291_v10 = vld [vmem:[#allocation12] sm:$0xff] }
 0x298   :  { %866 = vmatpush.bf16.msrb.mxu2 %v1291_v10  ;;  %v1303_v33 = vld [vmem:[%s1806_s15 + $0x20] sm:$0xff] }
 0x299   :  { %v589_v36 = vpack.c.bf16 %v567_v35, %v565_v34  ;;  %971 = vmatpush.bf16.msrb.mxu3 %v1303_v33 }
 0x29b   :  { %664 = vmatmul.bf16.gmra.mxu0 %v589_v36 }
 0x29d   :  { %972 = vmatpush.bf16.msrb.mxu3 %v1302_v37 }
 0x2e8   :  { %v650_v38 = vpop.f32.mrf.mxu0 }
 0x2e9   :  { %v651_v40 = vadd.f32 %v1320_v39, %v650_v38 }
 0x2eb   :  { %v670_v43 = vmax.f32 %v651_v40, 0.0  ;;  %v1300_v40 = vld [vmem:[%s1806_s15 + $0x8] sm:$0xff] }
 0x2f0   :  { %v652_v41 = vpop.f32.mrf.mxu0 }
 0x2f1   :  { %v653_v42 = vadd.f32 %v1320_v39, %v652_v41 }
 0x2f3   :  { %v671_v44 = vmax.f32 %v653_v42, 0.0 }
 0x2f5   :  { %v695_v45 = vpack.c.bf16 %v671_v44, %v670_v43 }
 0x2f7   :  { %758 = vmatmul.bf16.vlgmr.msrb.gmra.mxu1 %v695_v45 }
 0x2f8   :  { %v655_v46 = vpop.f32.mrf.mxu0 }
 0x2f9   :  { %v656_v47 = vadd.f32 %v1320_v39, %v655_v46 }
 0x2fb   :  { %v672_v50 = vmax.f32 %v656_v47, 0.0  ;;  %v1299_v47 = vld [vmem:[%s1806_s15] sm:$0xff] }
 0x300   :  { %v657_v48 = vpop.f32.mrf.mxu0 }
 0x301   :  { %v658_v49 = vadd.f32 %v1320_v39, %v657_v48 }
 0x303   :  { %v673_v51 = vmax.f32 %v658_v49, 0.0  ;;  %v1322_v49 = vld [vmem:[%s1805_s14] ss:$0 sm:$0xff] }
 0x305   :  { %v696_v52 = vpack.c.bf16 %v673_v51, %v672_v50 }
 0x307   :  { %763 = vmatmul.bf16.gmra.mxu1 %v696_v52 }
 0x308   :  { %v660_v54 = vpop.f32.mrf.mxu0 }
 0x309   :  { %v661_v57 = vadd.f32 %v1320_v39, %v660_v54 }
 0x30b   :  { %v674_v61 = vmax.f32 %v661_v57, 0.0 }
 0x310   :  { %v662_v58 = vpop.f32.mrf.mxu0 }
 0x311   :  { %v663_v59 = vadd.f32 %v1320_v39, %v662_v58 }
 0x313   :  { %v675_v62 = vmax.f32 %v663_v59, 0.0 }
 0x315   :  { %v697_v63 = vpack.c.bf16 %v675_v62, %v674_v61 }
 0x317   :  { %768 = vmatmul.bf16.gmra.mxu1 %v697_v63 }
 0x318   :  { %v665_v1 = vpop.f32.mrf.mxu0 }
 0x319   :  { %v666_v4 = vadd.f32 %v1320_v39, %v665_v1 }
 0x31b   :  { %v676_v7 = vmax.f32 %v666_v4, 0.0 }
 0x320   :  { %v667_v5 = vpop.f32.mrf.mxu0 }
 0x321   :  { %v668_v6 = vadd.f32 %v1320_v39, %v667_v5  ;;  %v1301_v39 = vld [vmem:[%s1806_s15 + $0x10] sm:$0xff] }
 0x322   :  { %973 = vmatpush.bf16.msrb.mxu3 %v1301_v39 }
 0x323   :  { %v677_v8 = vmax.f32 %v668_v6, 0.0 }
 0x325   :  { %v698_v9 = vpack.c.bf16 %v677_v8, %v676_v7 }
 0x326   :  { %974 = vmatpush.bf16.msrb.mxu3 %v1300_v40 }
 0x327   :  { %773 = vmatmul.bf16.gmra.mxu1 %v698_v9 }
 0x32a   :  { %975 = vmatpush.bf16.msrb.mxu3 %v1299_v47 }
 0x374   :  { %v759_v11 = vpop.f32.mrf.mxu1 }
 0x375   :  { %v760_v13 = vadd.f32 %v1321_v12, %v759_v11 }
 0x377   :  { %v779_v16 = vmax.f32 %v760_v13, 0.0  ;;  %v1323_v13 = vld [vmem:[%s1807_s16] ss:$0 sm:$0xff] }
 0x37c   :  { %v761_v14 = vpop.f32.mrf.mxu1 }
 0x37d   :  { %v762_v15 = vadd.f32 %v1321_v12, %v761_v14 }
 0x37f   :  { %v780_v17 = vmax.f32 %v762_v15, 0.0 }
 0x381   :  { %v804_v18 = vpack.c.bf16 %v780_v17, %v779_v16 }
 0x383   :  { %867 = vmatmul.bf16.vlgmr.msrb.gmra.mxu2 %v804_v18 }
 0x384   :  { %v764_v19 = vpop.f32.mrf.mxu1 }
 0x385   :  { %v765_v20 = vadd.f32 %v1321_v12, %v764_v19 }
 0x387   :  { %v781_v23 = vmax.f32 %v765_v20, 0.0 }
 0x38c   :  { %v766_v21 = vpop.f32.mrf.mxu1 }
 0x38d   :  { %v767_v22 = vadd.f32 %v1321_v12, %v766_v21 }
 0x38f   :  { %v782_v24 = vmax.f32 %v767_v22, 0.0 }
 0x391   :  { %v805_v25 = vpack.c.bf16 %v782_v24, %v781_v23 }
 0x393   :  { %872 = vmatmul.bf16.gmra.mxu2 %v805_v25 }
 0x394   :  { %v769_v27 = vpop.f32.mrf.mxu1 }
 0x395   :  { %v770_v30 = vadd.f32 %v1321_v12, %v769_v27 }
 0x397   :  { %v783_v34 = vmax.f32 %v770_v30, 0.0 }
 0x39c   :  { %v771_v31 = vpop.f32.mrf.mxu1 }
 0x39d   :  { %v772_v32 = vadd.f32 %v1321_v12, %v771_v31 }
 0x39f   :  { %v784_v35 = vmax.f32 %v772_v32, 0.0 }
 0x3a1   :  { %v806_v36 = vpack.c.bf16 %v784_v35, %v783_v34 }
 0x3a3   :  { %877 = vmatmul.bf16.gmra.mxu2 %v806_v36 }
 0x3a4   :  { %v774_v38 = vpop.f32.mrf.mxu1 }
 0x3a5   :  { %v775_v41 = vadd.f32 %v1321_v12, %v774_v38 }
 0x3a7   :  { %v785_v44 = vmax.f32 %v775_v41, 0.0 }
 0x3ac   :  { %v776_v42 = vpop.f32.mrf.mxu1 }
 0x3ad   :  { %v777_v43 = vadd.f32 %v1321_v12, %v776_v42 }
 0x3af   :  { %v786_v45 = vmax.f32 %v777_v43, 0.0 }
 0x3b1   :  { %v807_v46 = vpack.c.bf16 %v786_v45, %v785_v44 }
 0x3b3   :  { %882 = vmatmul.bf16.gmra.mxu2 %v807_v46 }
 0x406   :  { %v868_v48 = vpop.f32.mrf.mxu2 }
 0x407   :  { %v869_v50 = vadd.f32 %v1322_v49, %v868_v48 }
 0x409   :  { %v888_v53 = vmax.f32 %v869_v50, 0.0 }
 0x40e   :  { %v870_v51 = vpop.f32.mrf.mxu2 }
 0x40f   :  { %v871_v52 = vadd.f32 %v1322_v49, %v870_v51 }
 0x411   :  { %v889_v54 = vmax.f32 %v871_v52, 0.0 }
 0x413   :  { %v913_v55 = vpack.c.bf16 %v889_v54, %v888_v53 }
 0x415   :  { %976 = vmatmul.bf16.vlgmr.msrb.gmra.mxu3 %v913_v55 }
 0x416   :  { %v873_v56 = vpop.f32.mrf.mxu2 }
 0x417   :  { %v874_v57 = vadd.f32 %v1322_v49, %v873_v56 }
 0x419   :  { %v890_v60 = vmax.f32 %v874_v57, 0.0 }
 0x41e   :  { %v875_v58 = vpop.f32.mrf.mxu2 }
 0x41f   :  { %v876_v59 = vadd.f32 %v1322_v49, %v875_v58 }
 0x421   :  { %v891_v61 = vmax.f32 %v876_v59, 0.0 }
 0x423   :  { %v914_v62 = vpack.c.bf16 %v891_v61, %v890_v60 }
 0x425   :  { %981 = vmatmul.bf16.gmra.mxu3 %v914_v62 }
 0x426   :  { %v878_v63 = vpop.f32.mrf.mxu2 }
 0x427   :  { %v879_v0 = vadd.f32 %v1322_v49, %v878_v63 }
 0x429   :  { %v892_v3 = vmax.f32 %v879_v0, 0.0 }
 0x42e   :  { %v880_v1 = vpop.f32.mrf.mxu2 }
 0x42f   :  { %v881_v2 = vadd.f32 %v1322_v49, %v880_v1 }
 0x431   :  { %v893_v4 = vmax.f32 %v881_v2, 0.0 }
 0x433   :  { %v915_v5 = vpack.c.bf16 %v893_v4, %v892_v3 }
 0x435   :  { %986 = vmatmul.bf16.gmra.mxu3 %v915_v5 }
 0x436   :  { %v883_v6 = vpop.f32.mrf.mxu2 }
 0x437   :  { %v884_v7 = vadd.f32 %v1322_v49, %v883_v6 }
 0x439   :  { %v894_v10 = vmax.f32 %v884_v7, 0.0 }
 0x43e   :  { %v885_v8 = vpop.f32.mrf.mxu2 }
 0x43f   :  { %v886_v9 = vadd.f32 %v1322_v49, %v885_v8 }
 0x441   :  { %v895_v11 = vmax.f32 %v886_v9, 0.0 }
 0x443   :  { %v916_v12 = vpack.c.bf16 %v895_v11, %v894_v10 }
 0x445   :  { %991 = vmatmul.bf16.gmra.mxu3 %v916_v12 }
 0x498   :  { %v977_v14 = vpop.f32.mrf.mxu3 }
 0x499   :  { %v978_v15 = vadd.f32 %v1323_v13, %v977_v14 }
 0x49b   :  { %997 = vst.msk [vmem:[%s1808_s17] sm:$0xff] %vm196_vm1, %v978_v15 }
 0x4a0   :  { %v979_v16 = vpop.f32.mrf.mxu3 }
 0x4a1   :  { %v980_v17 = vadd.f32 %v1323_v13, %v979_v16 }
 0x4a3   :  { %998 = vst.msk [vmem:[%s1808_s17 + $0x8] sm:$0xff] %vm196_vm1, %v980_v17 }
 0x4a8   :  { %v982_v18 = vpop.f32.mrf.mxu3 }
 0x4a9   :  { %v983_v19 = vadd.f32 %v1323_v13, %v982_v18 }
 0x4ab   :  { %999 = vst.msk [vmem:[%s1808_s17 + $0x10] sm:$0xff] %vm196_vm1, %v983_v19 }
 0x4b0   :  { %v984_v20 = vpop.f32.mrf.mxu3 }
 0x4b1   :  { %v985_v21 = vadd.f32 %v1323_v13, %v984_v20 }
 0x4b3   :  { %1000 = vst.msk [vmem:[%s1808_s17 + $0x18] sm:$0xff] %vm196_vm1, %v985_v21 }
 0x4b8   :  { %v987_v22 = vpop.f32.mrf.mxu3 }
 0x4b9   :  { %v988_v23 = vadd.f32 %v1323_v13, %v987_v22 }
 0x4bb   :  { %1001 = vst.msk [vmem:[%s1808_s17 + $0x20] sm:$0xff] %vm196_vm1, %v988_v23 }
 0x4c0   :  { %v989_v24 = vpop.f32.mrf.mxu3 }
 0x4c1   :  { %v990_v25 = vadd.f32 %v1323_v13, %v989_v24 }
 0x4c3   :  { %1002 = vst.msk [vmem:[%s1808_s17 + $0x28] sm:$0xff] %vm196_vm1, %v990_v25 }
 0x4c8   :  { %v992_v26 = vpop.f32.mrf.mxu3 }
 0x4c9   :  { %v993_v27 = vadd.f32 %v1323_v13, %v992_v26 }
 0x4cb   :  { %1003 = vst.msk [vmem:[%s1808_s17 + $0x30] sm:$0xff] %vm196_vm1, %v993_v27 }
 0x4d0   :  { %v994_v28 = vpop.f32.mrf.mxu3 }
 0x4d1   :  { %v995_v29 = vadd.f32 %v1323_v13, %v994_v28 }
 0x4d3   :  { %1004 = vst.msk [vmem:[%s1808_s17 + $0x38] sm:$0xff] %vm196_vm1, %v995_v29 }
 0x4d4   :  { %1009 = vsyncpa [#allocation3], 1 }
 0x4d5   :  { %1010 = vsyncpa [#allocation5], 1 }
 0x4d6   :  { %1011 = vsyncpa [#allocation8], 1 }
 0x4d7   :  { %1012 = vsyncpa [#allocation11], 1 }

</bundles_post_ra>
